<compile_context>
chip_gen: v7x
topology: tpu7x:2x2x1
jax: 0.10.0
libtpu: 0.0.40
codegen_flags: <defaults>
</compile_context>

<pallas_src>
import functools

import numpy as np

import jax
import jax.numpy as jnp
from jax.experimental import pallas as pl
from jax.experimental.pallas import tpu as pltpu


# ----------------------------------------------------------------------------
# Extended-precision constants (host-side, float64 -> split f32).
# ----------------------------------------------------------------------------

def _split_hi(x: np.ndarray, keep_bits: int) -> np.ndarray:
    """Truncate f32 mantissa to `keep_bits` significant bits (toward zero)."""
    x = np.ascontiguousarray(np.asarray(x, dtype=np.float32))
    u = x.view(np.uint32)
    drop = 24 - keep_bits
    mask = np.uint32(((1 << 32) - 1) ^ ((1 << drop) - 1))
    return (u & mask).view(np.float32)


_OMEGA_HI_BITS = 11          # pos * omega_hi exact for integer |pos| < 2^13
_TWO_PI_F64 = 2.0 * np.pi
_TWO_PI_HI = float(_split_hi(np.array([_TWO_PI_F64], np.float32), 12)[0])
_TWO_PI_LO = float(np.float32(_TWO_PI_F64 - _TWO_PI_HI))
_INV_2PI = float(np.float32(1.0 / _TWO_PI_F64))


# ----------------------------------------------------------------------------
# Kernel
# ----------------------------------------------------------------------------

def _rope_kernel(ids_ref, const_ref, out_ref, *, n_axes: int):
    # ids_ref:   (TS, n_axes)        integer positions (|pos| < 2^13 for the
    #                                exact hi-product guarantee)
    # const_ref: (2*n_axes+1, Wp)    rows 0..n-1      : axis-masked omega_hi
    #                                rows n..2n-1     : axis-masked omega_lo
    #                                row  2n          : phase (0 sin / pi/2 cos)
    #            columns sin/cos-interleaved per frequency, zero past W.
    # out_ref:   (TS, Wp)            Wp = round_up(2*Dh, 128) -> lane-dense.
    pos = ids_ref[...].astype(jnp.float32)                   # (TS, n_axes)
    c = const_ref[...]                                       # (2n+1, Wp)

    phase = c[2 * n_axes:2 * n_axes + 1, :]                  # (1, Wp)

    # Per column only one axis has a nonzero omega, so the hi accumulation
    # stays exact (adding exact zeros).  Pure VPU broadcast FMA-style work.
    p_hi = pos[:, 0:1] * c[0:1, :]                           # exact products
    p_lo = phase + pos[:, 0:1] * c[n_axes:n_axes + 1, :]
    for a in range(1, n_axes):                               # tiny static loop
        p_hi = p_hi + pos[:, a:a + 1] * c[a:a + 1, :]
        p_lo = p_lo + pos[:, a:a + 1] * c[n_axes + a:n_axes + a + 1, :]

    # Cody-Waite mod-2pi reduction of the split angle (hi + lo), then a
    # single sin per output element (cos columns carry a +pi/2 phase).
    k = jnp.floor((p_hi + p_lo) * _INV_2PI + 0.5)            # |k| < 2^12
    r = (p_hi - k * _TWO_PI_HI) + (p_lo - k * _TWO_PI_LO)    # |r| ~ <= pi
    out_ref[...] = jnp.sin(r)


# ----------------------------------------------------------------------------
# Module wrapper
# ----------------------------------------------------------------------------

class EmbedND:
    def __init__(self, dim: int, theta: int, axes_dim,
                 *, tile_rows: int = 2048, single_block_rows: int = 1024):
        self.dim = dim
        self.theta = theta
        self.axes_dim = list(axes_dim)
        for d in self.axes_dim:
            assert d % 2 == 0, "The dimension must be even."

        n_axes = len(self.axes_dim)
        d_half = sum(d // 2 for d in self.axes_dim)
        W = 2 * d_half
        W_pad = 128 * ((W + 127) // 128)      # lane-dense (unmasked) stores

        # Constant table (host, f64 math): axis-masked split omegas + phase.
        consts = np.zeros((2 * n_axes + 1, W_pad), dtype=np.float32)
        col = 0
        for a, d in enumerate(self.axes_dim):
            scale = np.arange(0, d, 2, dtype=np.float64) / float(d)
            omega = 1.0 / (float(theta) ** scale)                 # f64 (d//2,)
            om_hi = _split_hi(omega, _OMEGA_HI_BITS)               # 11-bit hi
            om_lo = (omega - om_hi.astype(np.float64)).astype(np.float32)
            consts[a, col:col + d:2] = om_hi                       # sin cols
            consts[a, col + 1:col + d:2] = om_hi                   # cos cols
            consts[n_axes + a, col:col + d:2] = om_lo
            consts[n_axes + a, col + 1:col + d:2] = om_lo
            consts[2 * n_axes, col + 1:col + d:2] = np.float32(np.pi / 2.0)
            col += d

        self._consts = jnp.asarray(consts)                # (2*n_axes+1, W_pad)
        self._n_axes = n_axes
        self._d_half = d_half
        self._w = W
        self._w_pad = W_pad
        self._tile_rows = max(8, (tile_rows // 8) * 8)
        self._single_block_rows = single_block_rows

    def __call__(self, ids: jnp.ndarray) -> jnp.ndarray:
        # ids: (S, n_axes) -> diffusers >= 0.31.0 path adds the batch dim.
        assert ids.ndim == 2 and ids.shape[-1] == self._n_axes
        S = ids.shape[0]
        n_axes = self._n_axes
        Wp = self._w_pad

        if S <= self._single_block_rows:
            # Single block: block_shape == full array dims (always legal).
            ts, grid = S, (1,)
        else:
            # Even block count -> the "parallel" S axis splits evenly across
            # v7x's two TensorCores; ts is a multiple of 8 (legal sublanes)
            # and capped near tile_rows (~1 MiB/buffer in VMEM).
            nblocks = 2 * pl.cdiv(S, 2 * self._tile_rows)
            ts = 8 * pl.cdiv(pl.cdiv(S, nblocks), 8)
            grid = (pl.cdiv(S, ts),)

        kernel = functools.partial(_rope_kernel, n_axes=n_axes)

        out2d = pl.pallas_call(
            kernel,
            out_shape=jax.ShapeDtypeStruct((S, Wp), jnp.float32),
            grid=grid,
            in_specs=[
                pl.BlockSpec((ts, n_axes), lambda i: (i, 0)),
                pl.BlockSpec((2 * n_axes + 1, Wp), lambda i: (0, 0)),
            ],
            out_specs=pl.BlockSpec((ts, Wp), lambda i: (i, 0)),
            compiler_params=pltpu.CompilerParams(
                dimension_semantics=("parallel",)),
        )(ids, self._consts)

        if Wp != self._w:
            # Only for non-flux axes_dim configs whose width is not a
            # multiple of 128; the flux config hits Wp == W == 128.
            out2d = out2d[:, :self._w]

        # (S, 2*Dh) interleaved -> (1, 1, S, Dh, 1, 2): contiguous row-major
        # reinterpretation, no data movement for the flux config.
        return out2d.reshape(1, 1, S, self._d_half, 1, 2)


# ----------------------------------------------------------------------------
# Reference (numpy float64, replicating the torch code path exactly)
# ----------------------------------------------------------------------------

def _reference_embed_nd_np(ids_np: np.ndarray, axes_dim, theta) -> np.ndarray:
    pos = ids_np.astype(np.float64)                       # (S, n_axes)
    S = ids_np.shape[0]
    outs = []
    for i, d in enumerate(axes_dim):
        scale = np.arange(0, d, 2, dtype=np.float64) / float(d)
        omega = 1.0 / (float(theta) ** scale)             # (d//2,)
        ang = pos[:, i:i + 1] * omega[None, :]            # (S, d//2)
        stacked = np.stack([np.sin(ang), np.cos(ang)], axis=-1)
        outs.append(stacked.reshape(1, S, d // 2, 1, 2))
    emb = np.concatenate(outs, axis=-3)                   # (1, S, Dh, 1, 2)
    return emb[:, None].astype(np.float32)                # (1, 1, S, Dh, 1, 2)


if __name__ == "__main__":
    # Flux configuration (2 * sum(d // 2) == 128 -> lane-dense output).
    axes_dim = [16, 56, 56]
    dim = sum(axes_dim)            # 128
    theta = 10000
    n_axes = len(axes_dim)

    # Case 1: tiny single-block case, small positions.
    module = EmbedND(dim=dim, theta=theta, axes_dim=axes_dim)
    S1 = 8
    ids1 = jax.random.randint(jax.random.PRNGKey(0), (S1, n_axes),
                              minval=0, maxval=64, dtype=jnp.int32)
    out1 = jax.block_until_ready(module(ids1))
    ref1 = _reference_embed_nd_np(np.asarray(ids1), axes_dim, theta)
    assert out1.shape == (1, 1, S1, dim // 2, 1, 2), out1.shape
    assert out1.dtype == jnp.float32
    err1 = float(np.max(np.abs(np.asarray(out1) - ref1)))
    assert err1 < 1e-5, err1

    # Case 2: multi-block pipelined grid (even block count, exercises the
    # tiled path with a small tile override) and large position magnitudes
    # (up to 8191) to validate the split-product + mod-2pi reduction against
    # the float64 reference.
    module_tiled = EmbedND(dim=dim, theta=theta, axes_dim=axes_dim,
                           tile_rows=128, single_block_rows=64)
    S2 = 512
    ids2 = jax.random.randint(jax.random.PRNGKey(0), (S2, n_axes),
                              minval=0, maxval=8192, dtype=jnp.int32)
    out2 = jax.block_until_ready(module_tiled(ids2))
    ref2 = _reference_embed_nd_np(np.asarray(ids2), axes_dim, theta)
    assert out2.shape == (1, 1, S2, dim // 2, 1, 2), out2.shape
    err2 = float(np.max(np.abs(np.asarray(out2) - ref2)))
    assert err2 < 5e-5, err2

    print("KERNEL_OK")
</pallas_src>

<mosaic_0001>
module attributes {stable_mosaic.version = 11 : i64} {
  func.func @_rope_kernel(%arg0: i32, %arg1: memref<8x3xi32, #tpu.memory_space<vmem>>, %arg2: memref<7x128xf32, #tpu.memory_space<vmem>>, %arg3: memref<8x128xf32, #tpu.memory_space<vmem>>) attributes {dimension_semantics = [#tpu.dimension_semantics<parallel>], iteration_bounds = array<i64: 1>, scalar_prefetch = 0 : i64, scratch_operands = 0 : i64, tpu.core_type = #tpu.core_type<tc>, window_params = [{transform_indices = @transform_0, window_bounds = array<i64: 8, 3>}, {pipeline_mode = #tpu.pipeline_mode<synchronous>, transform_indices = @transform_1, window_bounds = array<i64: 7, 128>}, {transform_indices = @transform_2, window_bounds = array<i64: 8, 128>}]} {
    %c0 = arith.constant 0 : index
    %c0_0 = arith.constant 0 : index
    %0 = vector.load %arg1[%c0, %c0_0] : memref<8x3xi32, #tpu.memory_space<vmem>>, vector<8x3xi32>
    %1 = arith.sitofp %0 : vector<8x3xi32> to vector<8x3xf32>
    %c0_1 = arith.constant 0 : index
    %c0_2 = arith.constant 0 : index
    %2 = vector.load %arg2[%c0_1, %c0_2] : memref<7x128xf32, #tpu.memory_space<vmem>>, vector<7x128xf32>
    %3 = vector.extract_strided_slice %2 {offsets = [6, 0], sizes = [1, 128], strides = [1, 1]} : vector<7x128xf32> to vector<1x128xf32>
    %4 = vector.extract_strided_slice %1 {offsets = [0, 0], sizes = [8, 1], strides = [1, 1]} : vector<8x3xf32> to vector<8x1xf32>
    %5 = vector.extract_strided_slice %2 {offsets = [0, 0], sizes = [1, 128], strides = [1, 1]} : vector<7x128xf32> to vector<1x128xf32>
    %6 = vector.broadcast %4 : vector<8x1xf32> to vector<8x128xf32>
    %7 = vector.broadcast %5 : vector<1x128xf32> to vector<8x128xf32>
    %8 = arith.mulf %6, %7 : vector<8x128xf32>
    %9 = vector.extract_strided_slice %1 {offsets = [0, 0], sizes = [8, 1], strides = [1, 1]} : vector<8x3xf32> to vector<8x1xf32>
    %10 = vector.extract_strided_slice %2 {offsets = [3, 0], sizes = [1, 128], strides = [1, 1]} : vector<7x128xf32> to vector<1x128xf32>
    %11 = vector.broadcast %9 : vector<8x1xf32> to vector<8x128xf32>
    %12 = vector.broadcast %10 : vector<1x128xf32> to vector<8x128xf32>
    %13 = arith.mulf %11, %12 : vector<8x128xf32>
    %14 = vector.broadcast %3 : vector<1x128xf32> to vector<8x128xf32>
    %15 = arith.addf %14, %13 : vector<8x128xf32>
    %16 = vector.extract_strided_slice %1 {offsets = [0, 1], sizes = [8, 1], strides = [1, 1]} : vector<8x3xf32> to vector<8x1xf32>
    %17 = vector.extract_strided_slice %2 {offsets = [1, 0], sizes = [1, 128], strides = [1, 1]} : vector<7x128xf32> to vector<1x128xf32>
    %18 = vector.broadcast %16 : vector<8x1xf32> to vector<8x128xf32>
    %19 = vector.broadcast %17 : vector<1x128xf32> to vector<8x128xf32>
    %20 = arith.mulf %18, %19 : vector<8x128xf32>
    %21 = arith.addf %8, %20 : vector<8x128xf32>
    %22 = vector.extract_strided_slice %1 {offsets = [0, 1], sizes = [8, 1], strides = [1, 1]} : vector<8x3xf32> to vector<8x1xf32>
    %23 = vector.extract_strided_slice %2 {offsets = [4, 0], sizes = [1, 128], strides = [1, 1]} : vector<7x128xf32> to vector<1x128xf32>
    %24 = vector.broadcast %22 : vector<8x1xf32> to vector<8x128xf32>
    %25 = vector.broadcast %23 : vector<1x128xf32> to vector<8x128xf32>
    %26 = arith.mulf %24, %25 : vector<8x128xf32>
    %27 = arith.addf %15, %26 : vector<8x128xf32>
    %28 = vector.extract_strided_slice %1 {offsets = [0, 2], sizes = [8, 1], strides = [1, 1]} : vector<8x3xf32> to vector<8x1xf32>
    %29 = vector.extract_strided_slice %2 {offsets = [2, 0], sizes = [1, 128], strides = [1, 1]} : vector<7x128xf32> to vector<1x128xf32>
    %30 = vector.broadcast %28 : vector<8x1xf32> to vector<8x128xf32>
    %31 = vector.broadcast %29 : vector<1x128xf32> to vector<8x128xf32>
    %32 = arith.mulf %30, %31 : vector<8x128xf32>
    %33 = arith.addf %21, %32 : vector<8x128xf32>
    %34 = vector.extract_strided_slice %1 {offsets = [0, 2], sizes = [8, 1], strides = [1, 1]} : vector<8x3xf32> to vector<8x1xf32>
    %35 = vector.extract_strided_slice %2 {offsets = [5, 0], sizes = [1, 128], strides = [1, 1]} : vector<7x128xf32> to vector<1x128xf32>
    %36 = vector.broadcast %34 : vector<8x1xf32> to vector<8x128xf32>
    %37 = vector.broadcast %35 : vector<1x128xf32> to vector<8x128xf32>
    %38 = arith.mulf %36, %37 : vector<8x128xf32>
    %39 = arith.addf %27, %38 : vector<8x128xf32>
    %40 = arith.addf %33, %39 : vector<8x128xf32>
    %cst = arith.constant 0.159154937 : f32
    %41 = vector.broadcast %cst : f32 to vector<8x128xf32>
    %42 = arith.mulf %40, %41 : vector<8x128xf32>
    %cst_3 = arith.constant 5.000000e-01 : f32
    %43 = vector.broadcast %cst_3 : f32 to vector<8x128xf32>
    %44 = arith.addf %42, %43 : vector<8x128xf32>
    %45 = math.floor %44 : vector<8x128xf32>
    %cst_4 = arith.constant 6.281250e+00 : f32
    %46 = vector.broadcast %cst_4 : f32 to vector<8x128xf32>
    %47 = arith.mulf %45, %46 : vector<8x128xf32>
    %48 = arith.subf %33, %47 : vector<8x128xf32>
    %cst_5 = arith.constant 0.00193530717 : f32
    %49 = vector.broadcast %cst_5 : f32 to vector<8x128xf32>
    %50 = arith.mulf %45, %49 : vector<8x128xf32>
    %51 = arith.subf %39, %50 : vector<8x128xf32>
    %52 = arith.addf %48, %51 : vector<8x128xf32>
    %53 = math.sin %52 : vector<8x128xf32>
    %c0_6 = arith.constant 0 : index
    %c0_7 = arith.constant 0 : index
    %54 = vector.load %arg3[%c0_6, %c0_7] : memref<8x128xf32, #tpu.memory_space<vmem>>, vector<8x128xf32>
    tpu.vector_store %arg3[%c0_6, %c0_7], %53 {strides = array<i32>} : memref<8x128xf32, #tpu.memory_space<vmem>>, vector<8x128xf32>,
    return
  }
  func.func @transform_0(%arg0: i32) -> (i32, i32) {
    %c0_i32 = arith.constant 0 : i32
    %c0_i32_0 = arith.constant 0 : i32
    return %arg0, %c0_i32 : i32, i32
  }
  func.func @transform_1(%arg0: i32) -> (i32, i32) {
    %c0_i32 = arith.constant 0 : i32
    %c0_i32_0 = arith.constant 0 : i32
    %c0_i32_1 = arith.constant 0 : i32
    return %c0_i32, %c0_i32_0 : i32, i32
  }
  func.func @transform_2(%arg0: i32) -> (i32, i32) {
    %c0_i32 = arith.constant 0 : i32
    %c0_i32_0 = arith.constant 0 : i32
    return %arg0, %c0_i32 : i32, i32
  }
}

</mosaic_0001>

<bundles_post_ra>
// kernel: tpu_custom_call.1
= control target key start
LH: loop header
LB: loop body
LE: loop exit
PB: predicated region body
PF: predicated region fallthrough
CT: control target
= control target key end

     0   :  { %v245_v1 = vmov 0   ;;  %v246_v3 = vmov 2   ;;  %s309_s0 = inlined_call_operand.vmem [shape: s32[8,3], index: 0, kind: input, shape index: {}]   ;;  %s310_s1 = inlined_call_operand.vmem [shape: f32[7,128], index: 1, kind: input, shape index: {}]   ;;  %s311_s2 = inlined_call_operand.hbm [shape: f32[8,128], index: 2, kind: output, shape index: {}]  }
   0x1   :  { %v12_v0 = vld [vmem:[%s309_s0] sm:$0xff]  ;;  %213 = vset.pattern.permute.xlu0 %v245_v1  ;;  %215 = vset.pattern.permute.xlu1 %v246_v3 }
   0x2   :  { %v13_v2 = vcvt.s32.f32 %v12_v0 }
   0x3   :  { %7 = vsyncpa [#allocation3], 0  ;;  %v247_v4 = vmov 1   ;;  %v20_v5 = vlaneseq  ;;  %v14_v8 = vld [vmem:[%s310_s1] sm:$0x7f]  ;;  %s254_s0 = smov [#allocation2]  }
   0x4   :  { %17 = vperm.xlu0 %213, %v13_v2   ;;  %52 = vperm.xlu1 %215, %v13_v2   ;;  %v248_v55 = vmov 683565275   ;;  %v249_v57 = vmov 2475754826   ;;  %v250_v60 = vmov 2131351028  }
   0x5   :  { %v21_v6 = vshrl.u32 %v20_v5, 7  ;;  %v251_v63 = vmov 2102212464   ;;  %v253_v5 = vmov 1326507024   ;;  %s187_s1 = sshll.u32 %s254_s0, 4  ;;  %s188_s1 = int_to_ptr.vmem [resolvable:$true] %s187_s1 }
   0x6   :  { %s221_s13 = scalar_lea.vmem %s188_s1, 128  ;;  %p226_p1 = scmp.lt.s32.totalorder %s188_s1, %s188_s1 }
   0x7   :  { %v27_v7 = vsub.s32 3, %v21_v6  ;;  %v22_v9 = vsub.s32 0, %v21_v6  ;;  %v32_v10 = vsub.s32 6, %v21_v6  ;;  %v57_v11 = vsub.s32 2, %v21_v6  ;;  %p222_p0 = scmp.ne.s32.totalorder %s188_s1, %s221_s13  ;;  %p227_p2 = scmp.lt.s32.totalorder %s221_s13, %s221_s13 }
   0x8   :  { %214 = vset.pattern.permute.xlu0 %v247_v4  ;;  %v41_v13 = vsub.s32 1, %v21_v6  ;;  %v47_v14 = vsub.s32 4, %v21_v6  ;;  %v63_v15 = vsub.s32 5, %v21_v6 }
   0x9   :  { %36 = vperm.xlu0 %214, %v13_v2   ;;  %v28_v12 = vrot.slane %v14_v8, %v27_v7  ;;  %v23_v17 = vrot.slane %v14_v8, %v22_v9  ;;  %v33_v18 = vrot.slane %v14_v8, %v32_v10  ;;  %v58_v19 = vrot.slane %v14_v8, %v57_v11  ;;  %p228_p3 = por %p227_p2, %p226_p1 }
   0xa   :  { %v42_v21 = vrot.slane %v14_v8, %v41_v13  ;;  %v48_v22 = vrot.slane %v14_v8, %v47_v14  ;;  %v64_v23 = vrot.slane %v14_v8, %v63_v15  ;;  %v252_v2 = vmov 920167782  }
   0xb   :  { %p229_p4 = pnand %p228_p3, %p222_p0 }
   0xd   :  { %216 = vset.pattern.permute.xlu0 %v246_v3 }
  0x83   :  { %v18_v16 = vpop.permute.xlu0 %17  ;;  %v53_v24 = vpop.permute.xlu1 %52 }
  0x84   :  { %v29_v20 = vmul.f32 %v28_v12, %v18_v16  ;;  %v24_v25 = vmul.f32 %v23_v17, %v18_v16  ;;  %v59_v27 = vmul.f32 %v58_v19, %v53_v24  ;;  %v65_v31 = vmul.f32 %v64_v23, %v53_v24 }
  0x86   :  { %v34_v28 = vadd.f32 %v33_v18, %v29_v20 }
  0x88   :  { %v37_v26 = vpop.permute.xlu0 %36 }
  0x89   :  { %v43_v29 = vmul.f32 %v42_v21, %v37_v26  ;;  %v49_v30 = vmul.f32 %v48_v22, %v37_v26 }
  0x8b   :  { %v44_v32 = vadd.f32 %v43_v29, %v24_v25  ;;  %v50_v33 = vadd.f32 %v49_v30, %v34_v28 }
  0x8d   :  { %v60_v34 = vadd.f32 %v59_v27, %v44_v32  ;;  %v66_v35 = vadd.f32 %v65_v31, %v50_v33 }
  0x8f   :  { %v67_v36 = vadd.f32 %v66_v35, %v60_v34 }
  0x91   :  { %v68_v37 = vmul.f32 0.15915494, %v67_v36 }
  0x93   :  { %v69_v38 = vadd.f32 0.5, %v68_v37 }
  0x95   :  { %v70_v39 = vfloor.f32 %v69_v38 }
  0x97   :  { %v71_v40 = vmul.f32 6.28125, %v70_v39  ;;  %v73_v41 = vmul.f32 0.0019353072, %v70_v39 }
  0x99   :  { %v72_v42 = vsub.f32 %v60_v34, %v71_v40  ;;  %v74_v43 = vsub.f32 %v66_v35, %v73_v41 }
  0x9b   :  { %v276_v44 = vadd.f32 %v74_v43, %v72_v42 }
  0x9d   :  { %v79_v45 = vand.u32 2139095040, %v276_v44  ;;  %v76_v49 = vand.u32 2147483647, %v276_v44  ;;  %vm78_vm7 = vcmp.lt.s32.totalorder %v276_v44, 0  ;;  %vm168_vm12 = vweird.f32 %v276_v44 }
  0x9f   :  { %v80_v46 = vshrl.u32 %v79_v45, 23  ;;  %v83_v53 = vand.u32 8388607, %v76_v49  ;;  %vm77_vm8 = vcmp.le.f32.partialorder %v76_v49, 0.7853982 }
  0xa1   :  { %v195_v47 = vadd.s32 4294967169, %v80_v46  ;;  %v84_v7 = vor.u32 8388608, %v83_v53 }
  0xa3   :  { %v86_v48 = vadd.s32 1, %v195_v47  ;;  %v124_v21 = vshll.u32 %v84_v7, 8 }
  0xa5   :  { %vm87_vm0 = vcmp.gt.s32.totalorder %v86_v48, 0 }
  0xa6   :  { %v88_v50 = vsel %vm87_vm0, %v86_v48, 0 }
  0xa7   :  { %v90_v51 = vand.u32 31, %v88_v50  ;;  %v89_v54 = vshrl.u32 %v88_v50, 5 }
  0xa9   :  { %v91_v52 = vsub.s32 32, %v90_v51  ;;  %v93_v56 = vshll.u32 %v248_v55, %v90_v51  ;;  %v96_v58 = vshll.u32 %v249_v57, %v90_v51  ;;  %v99_v62 = vshll.u32 %v250_v60, %v90_v51 }
  0xaa   :  { %v102_v1 = vshll.u32 %v251_v63, %v90_v51  ;;  %v105_v4 = vshll.u32 %v252_v2, %v90_v51  ;;  %vm108_vm1 = vcmp.lt.s32.totalorder %v89_v54, 1  ;;  %vm111_vm2 = vcmp.lt.s32.totalorder %v89_v54, 4 }
  0xab   :  { %v94_v59 = vshrl.u32 %v249_v57, %v91_v52  ;;  %v97_v61 = vshrl.u32 %v250_v60, %v91_v52  ;;  %v100_v0 = vshrl.u32 %v251_v63, %v91_v52  ;;  %v103_v3 = vshrl.u32 %v252_v2, %v91_v52 }
  0xac   :  { %v106_v6 = vshrl.u32 %v253_v5, %v91_v52  ;;  %v92_v16 = vshrl.u32 %v248_v55, %v91_v52  ;;  %vm110_vm3 = vcmp.lt.s32.totalorder %v89_v54, 3  ;;  %vm109_vm4 = vcmp.lt.s32.totalorder %v89_v54, 2 }
  0xad   :  { %v95_v8 = vor.u32 %v94_v59, %v93_v56  ;;  %v98_v9 = vor.u32 %v97_v61, %v96_v58  ;;  %v101_v10 = vor.u32 %v100_v0, %v99_v62  ;;  %v104_v11 = vor.u32 %v103_v3, %v102_v1 }
  0xae   :  { %v107_v12 = vor.u32 %v106_v6, %v105_v4 }
  0xaf   :  { %v113_v13 = vsel %vm111_vm2, %v101_v10, 2102212464  ;;  %v116_v14 = vsel %vm108_vm1, %v95_v8, %v98_v9  ;;  %v120_v15 = vsel %vm108_vm1, %v98_v9, %v101_v10  ;;  %v117_v17 = vsel %vm111_vm2, %v104_v11, 920167782 }
  0xb0   :  { %v121_v18 = vsel %vm111_vm2, %v107_v12, 1326507024  ;;  %v118_v19 = vsel %vm110_vm3, %v101_v10, %v117_v17  ;;  %v112_v22 = vsel %vm108_vm1, %v92_v16, %v95_v8  ;;  %v114_v23 = vsel %vm110_vm3, %v98_v9, %v113_v13 }
  0xb1   :  { %v122_v20 = vsel %vm110_vm3, %v104_v11, %v121_v18  ;;  %v119_v24 = vsel %vm109_vm4, %v116_v14, %v118_v19  ;;  %v115_v30 = vsel %vm109_vm4, %v112_v22, %v114_v23 }
  0xb2   :  { %v123_v25 = vsel %vm109_vm4, %v120_v15, %v122_v20  ;;  %v285_v28 = vmul.u32.u64.low %v124_v21, %v119_v24  ;;  %v286_v29 = vmul.u32.u64.high %v124_v21, %v119_v24, %v285_v28  ;;  %v131_v32 = vmul.u32 %v124_v21, %v115_v30 }
  0xb3   :  { %v282_v26 = vmul.u32.u64.low %v124_v21, %v123_v25  ;;  %v283_v27 = vmul.u32.u64.high %v124_v21, %v123_v25, %v282_v26 }
  0xb4   :  { %v134_v31 = vadd.s32 1, %v286_v29 }
  0xb5   :  { %vm133_vm5 = vc.u32 %v283_v27, %v285_v28  ;;  %v132_v45 = vadd.s32 %v285_v28, %v283_v27 }
  0xb6   :  { %v135_v33 = vsel %vm133_vm5, %v134_v31, %v286_v29 }
  0xb7   :  { %v136_v34 = vadd.s32 %v135_v33, %v131_v32 }
  0xb9   :  { %v137_v35 = vadd.s32 536870912, %v136_v34 }
  0xbb   :  { %v138_v36 = vshrl.u32 %v137_v35, 30 }
  0xbd   :  { %v139_v37 = vshll.u32 %v138_v36, 30  ;;  %v162_v58 = vsub.s32 4, %v138_v36 }
  0xbf   :  { %v140_v38 = vsub.s32 %v136_v34, %v139_v37  ;;  %v163_v61 = vsel %vm78_vm7, %v162_v58, %v138_v36 }
  0xc0   :  { %v165_v63 = vsel %vm77_vm8, 0, %v163_v61 }
  0xc1   :  { %v142_v39 = vsub.s32 0, %v140_v38  ;;  %v169_v0 = vadd.s32 3, %v165_v63 }
  0xc3   :  { %v196_v40 = vmin.u32 %v142_v39, %v140_v38  ;;  %v170_v1 = vand.u32 3, %v169_v0 }
  0xc5   :  { %v144_v41 = vclz %v196_v40  ;;  %vm175_vm9 = vcmp.eq.s32.totalorder %v170_v1, 2  ;;  %vm172_vm10 = vcmp.eq.s32.totalorder %v170_v1, 0  ;;  %vm171_vm11 = vcmp.lt.s32.totalorder %v170_v1, 2 }
  0xc7   :  { %v197_v42 = vadd.s32 4294967294, %v144_v41 }
  0xc9   :  { %vm198_vm6 = vcmp.lt.s32.totalorder %v197_v42, 0 }
  0xca   :  { %v147_v43 = vsel %vm198_vm6, 0, %v197_v42 }
  0xcb   :  { %v148_v46 = vsub.s32 32, %v147_v43  ;;  %v152_v47 = vsub.s32 4294967266, %v147_v43  ;;  %v149_v48 = vshll.u32 %v140_v38, %v147_v43 }
  0xcd   :  { %v150_v50 = vshrl.u32 %v132_v45, %v148_v46  ;;  %v153_v51 = vadd.s32 127, %v152_v47 }
  0xcf   :  { %v151_v52 = vor.u32 %v150_v50, %v149_v48  ;;  %v154_v53 = vshll.u32 %v153_v51, 23 }
  0xd1   :  { %v155_v54 = vor.u32 4788187, %v154_v53  ;;  %v158_v56 = vcvt.s32.f32 %v151_v52 }
  0xd3   :  { %v156_v55 = vand.u32 2147483647, %v155_v54 }
  0xd5   :  { %v159_v57 = vmul.f32 %v158_v56, %v156_v55 }
  0xd7   :  { %v160_v59 = vxor.u32 2147483648, %v159_v57 }
  0xd9   :  { %v161_v60 = vsel %vm78_vm7, %v160_v59, %v159_v57 }
  0xda   :  { %v164_v62 = vsel %vm77_vm8, %v276_v44, %v161_v60 }
  0xdb   :  { %217 = vcosq.f32 %v164_v62 }
  0xdc   :  { %219 = vsinq.f32 %v164_v62 }
  0xe5   :  { %v218_v2 = vpop.eup %217 }
  0xe6   :  { %v220_v3 = vpop.eup %219  ;;  %v176_v4 = vxor.u32 2147483648, %v218_v2 }
  0xe7   :  { %v173_v5 = vxor.u32 2147483648, %v220_v3 }
  0xe8   :  { %v177_v6 = vsel %vm175_vm9, %v176_v4, %v220_v3 }
  0xe9   :  { %v174_v49 = vsel %vm172_vm10, %v218_v2, %v173_v5 }
  0xea   :  { %v178_v7 = vsel %vm171_vm11, %v174_v49, %v177_v6 }
  0xeb   :  { %v179_v8 = vsel %vm168_vm12, nan, %v178_v7 }
  0xec   :  { %180 = vst [vmem:[#allocation2] sm:$0xff] %v179_v8 }
  0xed   :  { %232 = shalt.err (!%p229_p4)
}
  0xee   :  { %s233_s16 = scalar_lea.hbm %s311_s2, 128 }
  0xef   :  { %p234_p5 = scmp.ne.s32.totalorder %s311_s2, %s233_s16  ;;  %p237_p6 = scmp.lt.u32.totalorder %s233_s16, %s311_s2 }
  0xf1   :  { %p239_p7 = pnand %p237_p6, %p234_p5 }
  0xf3   :  { %242 = shalt.err (!%p239_p7)
}
  0xf4   :  { %190 = dma.vmem_to_hbm [thread:$0]  %s188_s1, 128, %s311_s2, [#allocation3]  }
  0xf5   :  { %243 = dma.done.wait [#allocation3], 128  }
  0xf6   :  { %244 = vsyncadd [#allocation3], 4294967168 }
  0xf7   :  { %194 = vsyncpa [#allocation3], 1 }

</bundles_post_ra>
